<compile_context>
chip_gen: v7x
topology: tpu7x:2x2x1
jax: 0.10.0
libtpu: 0.0.40
codegen_flags: <defaults>
</compile_context>

<pallas_src>
import functools

import jax
import jax.numpy as jnp
from jax.experimental import pallas as pl
from jax.experimental.pallas import tpu as pltpu

_LANE = 128  # vreg lane width


def _round_up(n, m):
    return ((n + m - 1) // m) * m


def _min_sublane(dtype):
    # 8 for f32, 16 for bf16, 32 for int8/fp8 (packed sublanes).
    return max(8, 32 // jnp.dtype(dtype).itemsize)


def _batch_tiling(batch, sublane, block_batch):
    """Pick (row_tile, num_tiles) with bounded padding waste and, for
    non-tiny batches, at least two grid steps so v7x's two TCs both get work."""
    bp_min = _round_up(batch, sublane)
    if bp_min <= 2 * sublane:
        return bp_min, 1  # tiny batch: single tile, grid=(1,)
    ntiles = max(2, pl.cdiv(bp_min, block_batch))
    tm = _round_up(pl.cdiv(bp_min, ntiles), sublane)
    ntiles = pl.cdiv(bp_min, tm)
    return tm, ntiles


def singlenet_kernel(x_ref, w1_ref, b1_ref, w2_ref, b2_ref, o_ref):
    # First linear on the MXU with f32 accumulation: [tm, D] @ [D, Hp].
    h = jnp.dot(x_ref[...], w1_ref[...], preferred_element_type=jnp.float32)
    # Bias add + sigmoid in f32 (sigmoid's exp lands on the EUP slot).
    h = jax.nn.sigmoid(h + b1_ref[...].astype(jnp.float32))
    # Second linear: [tm, Hp] @ [Hp, Op] (cast h to param dtype for bf16 MXU feed).
    out = jnp.dot(h.astype(w2_ref.dtype), w2_ref[...],
                  preferred_element_type=jnp.float32)
    out = out + b2_ref[...].astype(jnp.float32)
    o_ref[...] = out.astype(o_ref.dtype)


def prepare_params(w1, b1, w2, b2):
    """Pad weights/biases once (call at init time, reuse every forward).

    w1: [input_dim, hidden_dim]  b1: [hidden_dim]
    w2: [hidden_dim, output_dim] b2: [output_dim]
    Returns lane-dense padded params:
    w1p: [input_dim, hp], b1p: [1, hp], w2p: [hp, op], b2p: [1, op].
    """
    input_dim, hidden_dim = w1.shape
    output_dim = w2.shape[1]
    hp = _round_up(hidden_dim, _LANE)
    op = _round_up(output_dim, _LANE)
    dt = w1.dtype
    w1p = jnp.zeros((input_dim, hp), dt).at[:, :hidden_dim].set(w1)
    b1p = jnp.zeros((1, hp), dt).at[0, :hidden_dim].set(b1)
    w2p = jnp.zeros((hp, op), dt).at[:hidden_dim, :output_dim].set(w2)
    b2p = jnp.zeros((1, op), dt).at[0, :output_dim].set(b2)
    return w1p, b1p, w2p, b2p


@functools.partial(jax.jit,
                   static_argnames=("hidden_dim", "output_dim", "block_batch"))
def singlenet_forward(x, w1p, b1p, w2p, b2p, *, hidden_dim, output_dim,
                      block_batch=512):
    """Fused SingleNet forward.  Params must come from prepare_params()."""
    batch, input_dim = x.shape
    hp = w1p.shape[1]
    op = w2p.shape[1]
    dtype = x.dtype
    itemsize = jnp.dtype(dtype).itemsize

    sublane = _min_sublane(dtype)
    tm, ntiles = _batch_tiling(batch, sublane, block_batch)
    bp = tm * ntiles

    # Only the batch axis is padded (feature dim of x stays unpadded).
    xp = x if bp == batch else jnp.zeros((bp, input_dim), dtype).at[:batch].set(x)

    # Advisory cost hint from TRUE dims / actual DMA bytes (kernel is tiny).
    cost = pl.CostEstimate(
        flops=(2 * batch * input_dim * hidden_dim
               + 2 * batch * hidden_dim * output_dim
               + batch * (hidden_dim + output_dim)),
        transcendentals=batch * hidden_dim,
        bytes_accessed=itemsize * (xp.size + w1p.size + b1p.size + w2p.size
                                   + b2p.size + bp * op),
    )

    vmem = pltpu.MemorySpace.VMEM
    # NOTE: weights/biases use constant index_maps so they stay VMEM-resident;
    # they are tiny here, so default double-buffering is left alone
    # (pl.Buffered(1) would halve their footprint if dims grow).
    out_padded = pl.pallas_call(
        singlenet_kernel,
        out_shape=jax.ShapeDtypeStruct((bp, op), dtype),
        grid=(ntiles,),
        in_specs=[
            pl.BlockSpec((tm, input_dim), lambda i: (i, 0), memory_space=vmem),
            pl.BlockSpec((input_dim, hp), lambda i: (0, 0), memory_space=vmem),
            pl.BlockSpec((1, hp), lambda i: (0, 0), memory_space=vmem),
            pl.BlockSpec((hp, op), lambda i: (0, 0), memory_space=vmem),
            pl.BlockSpec((1, op), lambda i: (0, 0), memory_space=vmem),
        ],
        out_specs=pl.BlockSpec((tm, op), lambda i: (i, 0), memory_space=vmem),
        compiler_params=pltpu.CompilerParams(
            dimension_semantics=("parallel",),  # split batch tiles across TCs on v7x
        ),
        cost_estimate=cost,
    )(xp, w1p, b1p, w2p, b2p)

    # Strip batch / output-lane padding (fused into the same jit dispatch).
    return out_padded[:batch, :output_dim]


def init_params(key, input_dim, hidden_dim, output_dim, dtype=jnp.float32):
    # Deterministic init mimicking nn.Linear's uniform(-1/sqrt(fan_in), +1/sqrt(fan_in)).
    k1, k2, k3, k4 = jax.random.split(key, 4)
    bound1 = 1.0 / jnp.sqrt(input_dim)
    bound2 = 1.0 / jnp.sqrt(hidden_dim)
    # Weights stored as [in_features, out_features] (transposed vs. PyTorch storage).
    w1 = jax.random.uniform(k1, (input_dim, hidden_dim), dtype, -bound1, bound1)
    b1 = jax.random.uniform(k2, (hidden_dim,), dtype, -bound1, bound1)
    w2 = jax.random.uniform(k3, (hidden_dim, output_dim), dtype, -bound2, bound2)
    b2 = jax.random.uniform(k4, (output_dim,), dtype, -bound2, bound2)
    return w1, b1, w2, b2


def reference_forward(x, w1, b1, w2, b2):
    h = jax.nn.sigmoid(x @ w1 + b1)
    return h @ w2 + b2


if __name__ == "__main__":
    input_dim, hidden_dim, output_dim = 16, 32, 8
    batch = 8

    key = jax.random.PRNGKey(0)
    kx, kp = jax.random.split(key)
    x = jax.random.normal(kx, (batch, input_dim), jnp.float32)
    w1, b1, w2, b2 = init_params(kp, input_dim, hidden_dim, output_dim)

    # Pad params ONCE (not per forward call).
    w1p, b1p, w2p, b2p = prepare_params(w1, b1, w2, b2)

    out = singlenet_forward(x, w1p, b1p, w2p, b2p,
                            hidden_dim=hidden_dim, output_dim=output_dim)
    out = jax.block_until_ready(out)

    ref = reference_forward(x, w1, b1, w2, b2)
    assert out.shape == (batch, output_dim)
    assert jnp.allclose(out, ref, atol=1e-5, rtol=1e-5), "mismatch vs JAX reference"

    print("KERNEL_OK")
</pallas_src>

<mosaic_0001>
module attributes {stable_mosaic.version = 11 : i64} {
  func.func @singlenet_kernel(%arg0: i32, %arg1: memref<8x16xf32, #tpu.memory_space<vmem>>, %arg2: memref<16x128xf32, #tpu.memory_space<vmem>>, %arg3: memref<1x128xf32, #tpu.memory_space<vmem>>, %arg4: memref<128x128xf32, #tpu.memory_space<vmem>>, %arg5: memref<1x128xf32, #tpu.memory_space<vmem>>, %arg6: memref<8x128xf32, #tpu.memory_space<vmem>>) attributes {dimension_semantics = [#tpu.dimension_semantics<parallel>], iteration_bounds = array<i64: 1>, scalar_prefetch = 0 : i64, scratch_operands = 0 : i64, tpu.core_type = #tpu.core_type<tc>, window_params = [{transform_indices = @transform_0, window_bounds = array<i64: 8, 16>}, {pipeline_mode = #tpu.pipeline_mode<synchronous>, transform_indices = @transform_1, window_bounds = array<i64: 16, 128>}, {pipeline_mode = #tpu.pipeline_mode<synchronous>, transform_indices = @transform_2, window_bounds = array<i64: 1, 128>}, {pipeline_mode = #tpu.pipeline_mode<synchronous>, transform_indices = @transform_3, window_bounds = array<i64: 128, 128>}, {pipeline_mode = #tpu.pipeline_mode<synchronous>, transform_indices = @transform_4, window_bounds = array<i64: 1, 128>}, {transform_indices = @transform_5, window_bounds = array<i64: 8, 128>}]} {
    %c0 = arith.constant 0 : index
    %c0_0 = arith.constant 0 : index
    %0 = vector.load %arg1[%c0, %c0_0] : memref<8x16xf32, #tpu.memory_space<vmem>>, vector<8x16xf32>
    %c0_1 = arith.constant 0 : index
    %c0_2 = arith.constant 0 : index
    %1 = vector.load %arg2[%c0_1, %c0_2] : memref<16x128xf32, #tpu.memory_space<vmem>>, vector<16x128xf32>
    %cst = arith.constant dense<0.000000e+00> : vector<8x128xf32>
    %2 = tpu.matmul %0, %1, %cst {dimension_numbers = #tpu.dot_dimension_numbers<[1], [0], [0], [1], [0, 0, 1, 1], [], []>} : vector<8x16xf32>, vector<16x128xf32>, vector<8x128xf32> -> vector<8x128xf32>
    %c0_3 = arith.constant 0 : index
    %c0_4 = arith.constant 0 : index
    %3 = vector.load %arg3[%c0_3, %c0_4] : memref<1x128xf32, #tpu.memory_space<vmem>>, vector<1x128xf32>
    %4 = vector.broadcast %3 : vector<1x128xf32> to vector<8x128xf32>
    %5 = arith.addf %2, %4 : vector<8x128xf32>
    %6 = arith.negf %5 : vector<8x128xf32>
    %7 = math.exp %6 : vector<8x128xf32>
    %cst_5 = arith.constant 1.000000e+00 : f32
    %8 = vector.broadcast %cst_5 : f32 to vector<8x128xf32>
    %9 = arith.addf %8, %7 : vector<8x128xf32>
    %10 = arith.divf %8, %9 : vector<8x128xf32>
    %c0_6 = arith.constant 0 : index
    %c0_7 = arith.constant 0 : index
    %11 = vector.load %arg4[%c0_6, %c0_7] : memref<128x128xf32, #tpu.memory_space<vmem>>, vector<128x128xf32>
    %cst_8 = arith.constant dense<0.000000e+00> : vector<8x128xf32>
    %12 = tpu.matmul %10, %11, %cst_8 {dimension_numbers = #tpu.dot_dimension_numbers<[1], [0], [0], [1], [0, 0, 1, 1], [], []>} : vector<8x128xf32>, vector<128x128xf32>, vector<8x128xf32> -> vector<8x128xf32>
    %c0_9 = arith.constant 0 : index
    %c0_10 = arith.constant 0 : index
    %13 = vector.load %arg5[%c0_9, %c0_10] : memref<1x128xf32, #tpu.memory_space<vmem>>, vector<1x128xf32>
    %14 = vector.broadcast %13 : vector<1x128xf32> to vector<8x128xf32>
    %15 = arith.addf %12, %14 : vector<8x128xf32>
    %c0_11 = arith.constant 0 : index
    %c0_12 = arith.constant 0 : index
    %16 = vector.load %arg6[%c0_11, %c0_12] : memref<8x128xf32, #tpu.memory_space<vmem>>, vector<8x128xf32>
    tpu.vector_store %arg6[%c0_11, %c0_12], %15 {strides = array<i32>} : memref<8x128xf32, #tpu.memory_space<vmem>>, vector<8x128xf32>,
    return
  }
  func.func @transform_0(%arg0: i32) -> (i32, i32) {
    %c0_i32 = arith.constant 0 : i32
    %c0_i32_0 = arith.constant 0 : i32
    return %arg0, %c0_i32 : i32, i32
  }
  func.func @transform_1(%arg0: i32) -> (i32, i32) {
    %c0_i32 = arith.constant 0 : i32
    %c0_i32_0 = arith.constant 0 : i32
    %c0_i32_1 = arith.constant 0 : i32
    return %c0_i32, %c0_i32_0 : i32, i32
  }
  func.func @transform_2(%arg0: i32) -> (i32, i32) {
    %c0_i32 = arith.constant 0 : i32
    %c0_i32_0 = arith.constant 0 : i32
    %c0_i32_1 = arith.constant 0 : i32
    return %c0_i32, %c0_i32_0 : i32, i32
  }
  func.func @transform_3(%arg0: i32) -> (i32, i32) {
    %c0_i32 = arith.constant 0 : i32
    %c0_i32_0 = arith.constant 0 : i32
    %c0_i32_1 = arith.constant 0 : i32
    return %c0_i32, %c0_i32_0 : i32, i32
  }
  func.func @transform_4(%arg0: i32) -> (i32, i32) {
    %c0_i32 = arith.constant 0 : i32
    %c0_i32_0 = arith.constant 0 : i32
    %c0_i32_1 = arith.constant 0 : i32
    return %c0_i32, %c0_i32_0 : i32, i32
  }
  func.func @transform_5(%arg0: i32) -> (i32, i32) {
    %c0_i32 = arith.constant 0 : i32
    %c0_i32_0 = arith.constant 0 : i32
    return %arg0, %c0_i32 : i32, i32
  }
}

</mosaic_0001>

<bundles_post_ra>
// kernel: singlenet_forward.1
= control target key start
LH: loop header
LB: loop body
LE: loop exit
PB: predicated region body
PF: predicated region fallthrough
CT: control target
= control target key end

     0   :  { %10 = vsyncpa [#allocation3], 0  ;;  %s559_s0 = inlined_call_operand.hbm [shape: f32[8,16], index: 0, kind: input, shape index: {}]   ;;  %s560_s1 = inlined_call_operand.hbm [shape: f32[16,128], index: 1, kind: input, shape index: {}]   ;;  %s561_s2 = inlined_call_operand.vmem [shape: f32[1,128], index: 2, kind: input, shape index: {}]   ;;  %s562_s3 = inlined_call_operand.hbm [shape: f32[128,128], index: 3, kind: input, shape index: {}]   ;;  %s563_s4 = inlined_call_operand.vmem [shape: f32[1,128], index: 4, kind: input, shape index: {}]   ;;  %s564_s5 = inlined_call_operand.hbm [shape: f32[8,128], index: 5, kind: output, shape index: {}]  }
   0x1   :  { %11 = vsyncpa [#allocation6], 0 }
   0x2   :  { %12 = vsyncpa [#allocation4], 0  ;;  %s460_s18 = smov [#allocation5]   ;;  %s366_s22 = scalar_lea.hbm %s560_s1, 256 }
   0x3   :  { %s28_s19 = sshll.u32 %s460_s18, 4  ;;  %p367_p0 = scmp.ne.s32.totalorder %s560_s1, %s366_s22  ;;  %s29_s19 = int_to_ptr.vmem [resolvable:$true] %s28_s19 }
   0x4   :  { %p370_p1 = scmp.lt.u32.totalorder %s366_s22, %s560_s1 }
   0x6   :  { %p372_p2 = pnand %p370_p1, %p367_p0 }
   0x8   :  { %375 = shalt.err (!%p372_p2)
}
   0x9   :  { %s376_s27 = scalar_lea.vmem %s29_s19, 256  ;;  %p381_p4 = scmp.lt.s32.totalorder %s29_s19, %s29_s19 }
   0xa   :  { %p377_p3 = scmp.ne.s32.totalorder %s29_s19, %s376_s27  ;;  %p382_p5 = scmp.lt.s32.totalorder %s376_s27, %s376_s27 }
   0xc   :  { %p383_p6 = por %p382_p5, %p381_p4 }
   0xe   :  { %p384_p7 = pnand %p383_p6, %p377_p3 }
  0x10   :  { %387 = shalt.err (!%p384_p7)
}
  0x11   :  { %s461_s28 = smov 128   ;;  %s462_s29 = smov 8  }
  0x12   :  { %34 = dma.hbm_to_vmem [thread:$0]  %s560_s1, 256, %s29_s19, [#allocation6], %s461_s28, %s461_s28, %s462_s29  }
  0x13   :  { %s463_s7 = smov [#allocation2]   ;;  %s464_s9 = smov [#allocation7]  }
  0x14   :  { %s19_s8 = sshll.u32 %s463_s7, 4  ;;  %s42_s10 = sshll.u32 %s464_s9, 4  ;;  %s20_s8 = int_to_ptr.vmem [resolvable:$true] %s19_s8  ;;  %s43_s10 = int_to_ptr.vmem [resolvable:$true] %s42_s10 }
  0x15   :  { %s388_s13 = scalar_lea.hbm %s559_s0, 128 }
  0x16   :  { %p389_p8 = scmp.ne.s32.totalorder %s559_s0, %s388_s13  ;;  %p392_p9 = scmp.lt.u32.totalorder %s388_s13, %s559_s0 }
  0x18   :  { %p394_p10 = pnand %p392_p9, %p389_p8 }
  0x1a   :  { %397 = shalt.err (!%p394_p10)
}
  0x1b   :  { %s398_s1 = scalar_lea.vmem %s20_s8, 128  ;;  %p403_p12 = scmp.lt.s32.totalorder %s20_s8, %s20_s8 }
  0x1c   :  { %p399_p11 = scmp.ne.s32.totalorder %s20_s8, %s398_s1  ;;  %p404_p13 = scmp.lt.s32.totalorder %s398_s1, %s398_s1 }
  0x1e   :  { %p405_p0 = por %p404_p13, %p403_p12 }
  0x20   :  { %p406_p1 = pnand %p405_p0, %p399_p11 }
  0x22   :  { %409 = shalt.err (!%p406_p1)
}
  0x23   :  { %22 = dma.hbm_to_vmem [thread:$0]  %s559_s0, 128, %s20_s8, [#allocation3]  }
  0x24   :  { %s410_s22 = scalar_lea.hbm %s562_s3, 2048 }
  0x25   :  { %p411_p2 = scmp.ne.s32.totalorder %s562_s3, %s410_s22  ;;  %p414_p3 = scmp.lt.u32.totalorder %s410_s22, %s562_s3 }
  0x27   :  { %p416_p4 = pnand %p414_p3, %p411_p2 }
  0x29   :  { %419 = shalt.err (!%p416_p4)
}
  0x2a   :  { %s420_s27 = scalar_lea.vmem %s43_s10, 2048  ;;  %p425_p6 = scmp.lt.s32.totalorder %s43_s10, %s43_s10 }
  0x2b   :  { %p421_p5 = scmp.ne.s32.totalorder %s43_s10, %s420_s27  ;;  %p426_p7 = scmp.lt.s32.totalorder %s420_s27, %s420_s27 }
  0x2d   :  { %p427_p8 = por %p426_p7, %p425_p6 }
  0x2f   :  { %p428_p9 = pnand %p427_p8, %p421_p5 }
  0x31   :  { %431 = shalt.err (!%p428_p9)
}
  0x32   :  { %48 = dma.hbm_to_vmem [thread:$0]  %s562_s3, 2048, %s43_s10, [#allocation6], %s461_s28, %s461_s28, %s462_s29  }
  0x33   :  { %454 = dma.done.wait [#allocation3], 128  }
  0x34   :  { %455 = vsyncadd [#allocation3], 4294967168 }
  0x35   :  { %456 = dma.done.wait [#allocation6], 2304  }
  0x36   :  { %457 = vsyncadd [#allocation6], 4294964992  ;;  %v465_v0 = vmov 0.0|0.0   ;;  %vm466_vm0 = vmmov 0   ;;  %v467_v1 = vmov 0.0   ;;  %v61_v2 = vld [vmem:[#allocation5] sm:$0xff] }
  0x37   :  { %326 = vmatprep.subr.bf16.mxu0 %v465_v0  ;;  %288 = vmatprep.mubr.msk.f32.mxu0 %vm466_vm0, %v467_v1  ;;  %v62_v3 = vld [vmem:[#allocation5 + $0x8] sm:$0xff]  ;;  %v150_v5 = vld [vmem:[#allocation7] sm:$0xff]  ;;  %v151_v6 = vld [vmem:[#allocation7 + $0x8] sm:$0xff]  ;;  %vm70_vm1 = vcmask 130048   ;;  %s468_s7 = smov [#allocation8]  }
  0x38   :  { %329 = vmatprep.subr.bf16.mxu1 %v465_v0  ;;  %323 = vmatprep.mubr.msk.f32.mxu1 %vm466_vm0, %v467_v1  ;;  %v327_v4 = vpack.c.bf16 %v62_v3, %v61_v2  ;;  %v330_v7 = vpack.c.bf16 %v151_v6, %v150_v5  ;;  %v60_v8 = vld [vmem:[#allocation2] sm:$0xff]  ;;  %v152_v9 = vld [vmem:[#allocation7 + $0x10] sm:$0xff]  ;;  %v153_v10 = vld [vmem:[#allocation7 + $0x18] sm:$0xff]  ;;  %s250_s8 = sshll.u32 %s468_s7, 4  ;;  %s251_s8 = int_to_ptr.vmem [resolvable:$true] %s250_s8 }
  0x39   :  { %v333_v11 = vpack.c.bf16 %v153_v10, %v152_v9  ;;  %v154_v12 = vld [vmem:[#allocation7 + $0x20] sm:$0xff]  ;;  %v155_v13 = vld [vmem:[#allocation7 + $0x28] sm:$0xff]  ;;  %v156_v15 = vld [vmem:[#allocation7 + $0x30] sm:$0xff]  ;;  %p437_p11 = scmp.lt.s32.totalorder %s251_s8, %s251_s8 }
  0x3a   :  { %328 = vmatpush3.bf16.msra.mxu0 %v327_v4  ;;  %331 = vmatpush3.bf16.msra.mxu1 %v330_v7  ;;  %v336_v14 = vpack.c.bf16 %v155_v13, %v154_v12  ;;  %v157_v16 = vld [vmem:[#allocation7 + $0x38] sm:$0xff]  ;;  %v158_v18 = vld [vmem:[#allocation7 + $0x40] sm:$0xff]  ;;  %v159_v19 = vld [vmem:[#allocation7 + $0x48] sm:$0xff] }
  0x3b   :  { %332 = vmatprep.subr.bf16.mxu1 %v465_v0  ;;  %v339_v17 = vpack.c.bf16 %v157_v16, %v156_v15  ;;  %v342_v20 = vpack.c.bf16 %v159_v19, %v158_v18  ;;  %v160_v21 = vld [vmem:[#allocation7 + $0x50] sm:$0xff]  ;;  %v161_v22 = vld [vmem:[#allocation7 + $0x58] sm:$0xff]  ;;  %v162_v24 = vld [vmem:[#allocation7 + $0x60] sm:$0xff] }
  0x3c   :  { %v345_v23 = vpack.c.bf16 %v161_v22, %v160_v21  ;;  %v163_v25 = vld [vmem:[#allocation7 + $0x68] sm:$0xff]  ;;  %v164_v27 = vld [vmem:[#allocation7 + $0x70] sm:$0xff]  ;;  %v165_v28 = vld [vmem:[#allocation7 + $0x78] sm:$0xff] }
  0x3d   :  { %289 = vmatmul.mubr.msk.f32.vlgmr.msra.gmra.mrb[0].mxu0 %vm70_vm1, %v60_v8  ;;  %v348_v26 = vpack.c.bf16 %v163_v25, %v162_v24  ;;  %v351_v29 = vpack.c.bf16 %v165_v28, %v164_v27  ;;  %v260_v30 = vld [vmem:[%s561_s2] ss:$0 sm:$0xff]  ;;  %s432_s2 = scalar_lea.vmem %s251_s8, 128 }
  0x3e   :  { %334 = vmatpush3.bf16.msra.mxu1 %v333_v11  ;;  %v263_v38 = vld [vmem:[%s563_s4] ss:$0 sm:$0xff]  ;;  %p433_p10 = scmp.ne.s32.totalorder %s251_s8, %s432_s2  ;;  %p438_p12 = scmp.lt.s32.totalorder %s432_s2, %s432_s2 }
  0x3f   :  { %335 = vmatprep.subr.bf16.mxu1 %v465_v0 }
  0x40   :  { %p439_p13 = por %p438_p12, %p437_p11 }
  0x42   :  { %337 = vmatpush3.bf16.msra.mxu1 %v336_v14  ;;  %p440_p0 = pnand %p439_p13, %p433_p10 }
  0x43   :  { %338 = vmatprep.subr.bf16.mxu1 %v465_v0 }
  0x46   :  { %340 = vmatpush3.bf16.msra.mxu1 %v339_v17 }
  0x47   :  { %341 = vmatprep.subr.bf16.mxu1 %v465_v0 }
  0x4a   :  { %343 = vmatpush3.bf16.msra.mxu1 %v342_v20 }
  0x4b   :  { %344 = vmatprep.subr.bf16.mxu1 %v465_v0 }
  0x4e   :  { %346 = vmatpush3.bf16.msra.mxu1 %v345_v23 }
  0x4f   :  { %347 = vmatprep.subr.bf16.mxu1 %v465_v0 }
  0x52   :  { %349 = vmatpush3.bf16.msra.mxu1 %v348_v26 }
  0x53   :  { %350 = vmatprep.subr.bf16.mxu1 %v465_v0 }
  0x56   :  { %352 = vmatpush3.bf16.msra.mxu1 %v351_v29 }
 0x110   :  { %v140_v31 = vpop.f32.mrb[0].mxu0 }
 0x111   :  { %v141_v32 = vadd.f32 %v260_v30, %v140_v31  ;;  %v290_v33 = vpop.f32.mrb[1].mxu0 }
 0x113   :  { %v262_v34 = vmul.f32 -1.442695, %v141_v32 }
 0x115   :  { %362 = vpow2.f32 %v262_v34 }
 0x11f   :  { %v363_v35 = vpop.eup %362 }
 0x120   :  { %v147_v36 = vadd.f32 1.0, %v363_v35 }
 0x122   :  { %364 = vrcp.f32 %v147_v36 }
 0x12c   :  { %v365_v37 = vpop.eup %364 }
 0x12d   :  { %324 = vmatmul.mubr.f32.vlgmr.msra.gmra.mrb[0].mxu1 %v365_v37 }
 0x200   :  { %v239_v39 = vpop.f32.mrb[0].mxu1 }
 0x201   :  { %v240_v40 = vadd.f32 %v263_v38, %v239_v39  ;;  %v325_v41 = vpop.f32.mrb[1].mxu1 }
 0x203   :  { %243 = vst [vmem:[#allocation8] sm:$0xff] %v240_v40 }
 0x204   :  { %443 = shalt.err (!%p440_p0)
}
 0x205   :  { %s444_s11 = scalar_lea.hbm %s564_s5, 128 }
 0x206   :  { %p445_p1 = scmp.ne.s32.totalorder %s564_s5, %s444_s11  ;;  %p448_p2 = scmp.lt.u32.totalorder %s444_s11, %s564_s5 }
 0x208   :  { %p450_p3 = pnand %p448_p2, %p445_p1 }
 0x20a   :  { %453 = shalt.err (!%p450_p3)
}
 0x20b   :  { %253 = dma.vmem_to_hbm [thread:$0]  %s251_s8, 128, %s564_s5, [#allocation4]  }
 0x20c   :  { %458 = dma.done.wait [#allocation4], 128  }
 0x20d   :  { %459 = vsyncadd [#allocation4], 4294967168 }
 0x20e   :  { %257 = vsyncpa [#allocation3], 1 }
 0x20f   :  { %258 = vsyncpa [#allocation6], 1 }
 0x210   :  { %259 = vsyncpa [#allocation4], 1 }

</bundles_post_ra>
